<compile_context>
chip_gen: v6e
topology: v6e:2x2x1
jax: 0.10.0
libtpu: 0.0.40
codegen_flags: <defaults>
</compile_context>

<pallas_src>
import jax
import jax.numpy as jnp
from jax import lax
from jax.experimental import pallas as pl
from jax.experimental.pallas import tpu as pltpu


def _entropy_kernel(feat_ref, out_ref):
    """One (layer, batch-split) block -> partial sum of k-th NN distances.

    feat_ref: (1, Bs, C, HW) VMEM block (source dtype, cast in-kernel)
    out_ref : (1, 1, 1)      VMEM block, written exactly once per grid step
    """
    feat = feat_ref[0]                                  # (Bs, C, HW)
    Bs, C, HW = feat.shape
    K = C // 10                                         # static (compile-time)

    feat32 = feat.astype(jnp.float32)

    # --- pairwise squared euclidean distances --------------------------------
    f2 = feat32 * feat32
    sq_i = jnp.sum(f2, axis=2, keepdims=True)                          # (Bs,C,1)
    # Same row norms laid out along lanes via a tiny ones-matmul: avoids a
    # (Bs,C,1) -> (Bs,1,C) relayout/transpose of the norms.
    ones_row = jnp.ones((Bs, 1, HW), dtype=jnp.float32)
    sq_j = lax.dot_general(
        ones_row, f2,
        dimension_numbers=(((2,), (2,)), ((0,), (0,))),
        preferred_element_type=jnp.float32)                            # (Bs,1,C)

    # Gram via MXU: bf16 operands, f32 accumulation; batched over Bs, both
    # operands contract their last dim (no transpose of the big tile).
    fmx = feat.astype(jnp.bfloat16)
    gram = lax.dot_general(
        fmx, fmx,
        dimension_numbers=(((2,), (2,)), ((0,), (0,))),
        preferred_element_type=jnp.float32)                            # (Bs,C,C)

    row = lax.broadcasted_iota(jnp.int32, (Bs, C, C), 1)
    col = lax.broadcasted_iota(jnp.int32, (Bs, C, C), 2)

    d2 = jnp.maximum(sq_i + sq_j - 2.0 * gram, 0.01)    # clamp(min=0.01)
    # Pin the diagonal to the clamped self-distance exactly (bf16 rounding of
    # gram_ii would otherwise perturb it).
    d2 = jnp.where(row == col, jnp.float32(0.01), d2)
    # sqrt / nan_to_num deferred: d2 >= 0.01, so sqrt is always finite and
    # monotone -> the K-selection runs on squared distances.

    # --- K-th smallest (0-indexed) squared distance per row ------------------
    # Per-column epsilon tie-break: exactly one element matches the row min
    # each iteration, so no second "first index" min reduction is needed.
    # Perturbation of the k-th value is <= C * 1e-7, negligible vs the clamp.
    d = d2 + col.astype(jnp.float32) * jnp.float32(1e-7)
    big = jnp.float32(1e30)                              # finite mask (no inf)

    def mask_one_min(_, dcur):
        m = jnp.min(dcur, axis=-1, keepdims=True)        # one XLU reduce / iter
        return jnp.where(dcur == m, big, dcur)

    if K > 0:  # K == 0 (C < 10) degenerates to the plain row min (= 0.01)
        d = lax.fori_loop(0, K, mask_one_min, d,
                          unroll=True if K <= 16 else 4)

    kth = jnp.sqrt(jnp.min(d, axis=-1, keepdims=True))   # (Bs, C, 1) distances
    # Partial H_total for this (layer, batch-split) block; the combine over
    # splits and log(. + 1) happen in the wrapper.
    out_ref[...] = jnp.sum(kth, axis=(0, 1), keepdims=True)   # (1, 1, 1)


def _fused_layer_entropies(feats):
    """feats: (L, B, C, H, W) NCHW feature maps -> (L,) entropies.

    One pallas_call over a fully-parallel (layer, batch-split) grid; each grid
    step processes a whole half-batch in one block and writes one partial sum.
    """
    L, B, C, H, W = feats.shape
    HW = H * W
    # Split the batch in two (when even) so even a single-layer call gives
    # both v7x TensorCores work; v5e/v6e (1 TC) unaffected.
    S = 2 if (B % 2 == 0 and B >= 2) else 1
    Bs = B // S
    # TODO(synk): at detector scale avoid this reshape'd HBM stack (keep the
    # layers as separate kernel inputs or a BlockSpec on the original buffer)
    # and store bf16 in HBM.
    x = feats.reshape(L * S, Bs, C, HW)        # keep source dtype in HBM

    partial = pl.pallas_call(
        _entropy_kernel,
        out_shape=jax.ShapeDtypeStruct((L * S, 1, 1), jnp.float32),
        grid_spec=pltpu.PrefetchScalarGridSpec(
            num_scalar_prefetch=0,
            grid=(L, S),
            in_specs=[pl.BlockSpec((1, Bs, C, HW),
                                   lambda l, s: (l * S + s, 0, 0, 0))],
            out_specs=pl.BlockSpec((1, 1, 1),
                                   lambda l, s: (l * S + s, 0, 0)),
        ),
        compiler_params=pltpu.CompilerParams(
            # Every grid step writes its own output block -> fully parallel
            # (megacore-shardable on v7x across layers and batch halves).
            dimension_semantics=("parallel", "parallel"),
        ),
    )(x)

    h_total = partial[:, 0, 0].reshape(L, S).sum(axis=1)      # (L,)
    return jnp.log(h_total + 1.0)


def calculate_entropy_pallas(feats):
    """JAX/Pallas equivalent of calculate_entropy(feats) for one NCHW tensor."""
    return _fused_layer_entropies(feats[None])[0]


def entropy_loss_forward(net_info, loss_weight=1.0, pick_block_num=1):
    """Mirror of EntropyLoss.forward."""
    var = jnp.float32(0.0)
    for block in net_info[:pick_block_num]:
        # The reference needs entropies of block[2] and block[layer_i + 3] for
        # layer_i in range(2, len(block) - 3, 3)  ==  layers 2, 5, 8, ...
        layer_ids = list(range(2, len(block), 3))
        if len({tuple(block[i].shape) for i in layer_ids}) == 1:
            feats = jnp.stack([block[i] for i in layer_ids], axis=0)
            ents = _fused_layer_entropies(feats)               # one fused call
        else:
            # mixed shapes within a block: fall back to per-layer calls
            ents = jnp.stack([calculate_entropy_pallas(block[i]) for i in layer_ids])
        delta_entropy = ents[1:] - ents[:-1]
        # torch.var defaults to unbiased (ddof=1); NaN with a single delta,
        # mirroring torch.
        var = var + jnp.var(delta_entropy, ddof=1)
    # layer_entropy_loss is @weighted_loss(identity); with default weight /
    # avg_factor and 'mean' reduction on a scalar it is just `var`.
    eloss_var = loss_weight * var
    return {'eloss_var': [eloss_var]}


if __name__ == "__main__":
    key = jax.random.PRNGKey(0)
    B, C, H, W = 2, 32, 8, 8          # K = C // 10 = 3
    n_layers_in_block = 12            # entropies at layers 2, 5, 8, 11 -> 3 deltas

    keys = jax.random.split(key, n_layers_in_block)
    block = [jax.random.normal(k, (B, C, H, W), dtype=jnp.float32) for k in keys]
    net_info = [block]                # pick_block_num = 1

    out = entropy_loss_forward(net_info, loss_weight=1.0, pick_block_num=1)
    jax.block_until_ready(out['eloss_var'][0])
    print("KERNEL_OK")
</pallas_src>

<mosaic_0001>
module attributes {stable_mosaic.version = 11 : i64} {
  func.func @_entropy_kernel(%arg0: i32, %arg1: i32, %arg2: memref<1x1x32x64xf32, #tpu.memory_space<vmem>>, %arg3: memref<1x1x1xf32, #tpu.memory_space<vmem>>) attributes {dimension_semantics = [#tpu.dimension_semantics<parallel>, #tpu.dimension_semantics<parallel>], iteration_bounds = array<i64: 4, 2>, scalar_prefetch = 0 : i64, scratch_operands = 0 : i64, tpu.core_type = #tpu.core_type<tc>, window_params = [{transform_indices = @transform_0, window_bounds = array<i64: 1, 1, 32, 64>}, {transform_indices = @transform_1, window_bounds = array<i64: 1, 1, 1>}]} {
    %c0 = arith.constant 0 : index
    %c0_0 = arith.constant 0 : index
    %c0_1 = arith.constant 0 : index
    %c0_2 = arith.constant 0 : index
    %0 = vector.load %arg2[%c0, %c0_0, %c0_1, %c0_2] : memref<1x1x32x64xf32, #tpu.memory_space<vmem>>, vector<1x1x32x64xf32>
    %1 = vector.shape_cast %0 : vector<1x1x32x64xf32> to vector<1x32x64xf32>
    %2 = arith.mulf %1, %1 : vector<1x32x64xf32>
    %cst = arith.constant dense<0.000000e+00> : vector<1x32xf32>
    %3 = vector.multi_reduction <add>, %2, %cst [2] : vector<1x32x64xf32> to vector<1x32xf32>
    %4 = vector.shape_cast %3 : vector<1x32xf32> to vector<1x32x1xf32>
    %cst_3 = arith.constant 1.000000e+00 : f32
    %5 = vector.broadcast %cst_3 : f32 to vector<1x1x64xf32>
    %cst_4 = arith.constant dense<0.000000e+00> : vector<1x1x32xf32>
    %6 = tpu.matmul %5, %2, %cst_4 {dimension_numbers = #tpu.dot_dimension_numbers<[2], [2], [1], [1], [0, 0, 0, 1, 1, 1], [0], [0]>} : vector<1x1x64xf32>, vector<1x32x64xf32>, vector<1x1x32xf32> -> vector<1x1x32xf32>
    %7 = arith.truncf %1 : vector<1x32x64xf32> to vector<1x32x64xbf16>
    %cst_5 = arith.constant dense<0.000000e+00> : vector<1x32x32xf32>
    %8 = tpu.matmul %7, %7, %cst_5 {dimension_numbers = #tpu.dot_dimension_numbers<[2], [2], [1], [1], [0, 0, 0, 1, 1, 1], [0], [0]>} : vector<1x32x64xbf16>, vector<1x32x64xbf16>, vector<1x32x32xf32> -> vector<1x32x32xf32>
    %9 = tpu.iota {dimensions = array<i32: 1>} : vector<1x32x32xi32>
    %10 = tpu.iota {dimensions = array<i32: 2>} : vector<1x32x32xi32>
    %11 = vector.broadcast %4 : vector<1x32x1xf32> to vector<1x32x32xf32>
    %12 = vector.broadcast %6 : vector<1x1x32xf32> to vector<1x32x32xf32>
    %13 = arith.addf %11, %12 : vector<1x32x32xf32>
    %cst_6 = arith.constant 2.000000e+00 : f32
    %14 = vector.broadcast %cst_6 : f32 to vector<1x32x32xf32>
    %15 = arith.mulf %14, %8 : vector<1x32x32xf32>
    %16 = arith.subf %13, %15 : vector<1x32x32xf32>
    %cst_7 = arith.constant 0.00999999977 : f32
    %17 = vector.broadcast %cst_7 : f32 to vector<1x32x32xf32>
    %18 = arith.maximumf %16, %17 : vector<1x32x32xf32>
    %19 = arith.cmpi eq, %9, %10 : vector<1x32x32xi32>
    %cst_8 = arith.constant 0.00999999977 : f32
    %20 = vector.broadcast %cst_8 : f32 to vector<1x32x32xf32>
    %21 = arith.select %19, %20, %18 : vector<1x32x32xi1>, vector<1x32x32xf32>
    %22 = arith.sitofp %10 : vector<1x32x32xi32> to vector<1x32x32xf32>
    %cst_9 = arith.constant 1.000000e-07 : f32
    %23 = vector.broadcast %cst_9 : f32 to vector<1x32x32xf32>
    %24 = arith.mulf %22, %23 : vector<1x32x32xf32>
    %25 = arith.addf %21, %24 : vector<1x32x32xf32>
    %cst_10 = arith.constant 1.000000e+30 : f32
    %c0_i32 = arith.constant 0 : i32
    %cst_11 = arith.constant dense<0x7F800000> : vector<1x32xf32>
    %26 = vector.multi_reduction <minimumf>, %25, %cst_11 [2] : vector<1x32x32xf32> to vector<1x32xf32>
    %27 = vector.shape_cast %26 : vector<1x32xf32> to vector<1x32x1xf32>
    %28 = vector.broadcast %27 : vector<1x32x1xf32> to vector<1x32x32xf32>
    %29 = arith.cmpf oeq, %25, %28 : vector<1x32x32xf32>
    %30 = vector.broadcast %cst_10 : f32 to vector<1x32x32xf32>
    %31 = arith.select %29, %30, %25 : vector<1x32x32xi1>, vector<1x32x32xf32>
    %c1_i32 = arith.constant 1 : i32
    %cst_12 = arith.constant dense<0x7F800000> : vector<1x32xf32>
    %32 = vector.multi_reduction <minimumf>, %31, %cst_12 [2] : vector<1x32x32xf32> to vector<1x32xf32>
    %33 = vector.shape_cast %32 : vector<1x32xf32> to vector<1x32x1xf32>
    %34 = vector.broadcast %33 : vector<1x32x1xf32> to vector<1x32x32xf32>
    %35 = arith.cmpf oeq, %31, %34 : vector<1x32x32xf32>
    %36 = vector.broadcast %cst_10 : f32 to vector<1x32x32xf32>
    %37 = arith.select %35, %36, %31 : vector<1x32x32xi1>, vector<1x32x32xf32>
    %c2_i32 = arith.constant 2 : i32
    %cst_13 = arith.constant dense<0x7F800000> : vector<1x32xf32>
    %38 = vector.multi_reduction <minimumf>, %37, %cst_13 [2] : vector<1x32x32xf32> to vector<1x32xf32>
    %39 = vector.shape_cast %38 : vector<1x32xf32> to vector<1x32x1xf32>
    %40 = vector.broadcast %39 : vector<1x32x1xf32> to vector<1x32x32xf32>
    %41 = arith.cmpf oeq, %37, %40 : vector<1x32x32xf32>
    %42 = vector.broadcast %cst_10 : f32 to vector<1x32x32xf32>
    %43 = arith.select %41, %42, %37 : vector<1x32x32xi1>, vector<1x32x32xf32>
    %cst_14 = arith.constant dense<0x7F800000> : vector<1x32xf32>
    %44 = vector.multi_reduction <minimumf>, %43, %cst_14 [2] : vector<1x32x32xf32> to vector<1x32xf32>
    %45 = vector.shape_cast %44 : vector<1x32xf32> to vector<1x32x1xf32>
    %46 = math.sqrt %45 : vector<1x32x1xf32>
    %cst_15 = arith.constant dense<0.000000e+00> : vector<1xf32>
    %47 = vector.multi_reduction <add>, %46, %cst_15 [0, 1] : vector<1x32x1xf32> to vector<1xf32>
    %48 = vector.shape_cast %47 : vector<1xf32> to vector<1x1x1xf32>
    %c0_16 = arith.constant 0 : index
    %c0_17 = arith.constant 0 : index
    %c0_18 = arith.constant 0 : index
    %49 = vector.load %arg3[%c0_16, %c0_17, %c0_18] : memref<1x1x1xf32, #tpu.memory_space<vmem>>, vector<1x1x1xf32>
    tpu.vector_store %arg3[%c0_16, %c0_17, %c0_18], %48 {strides = array<i32>} : memref<1x1x1xf32, #tpu.memory_space<vmem>>, vector<1x1x1xf32>,
    return
  }
  func.func @transform_0(%arg0: i32, %arg1: i32) -> (i32, i32, i32, i32) {
    %c2_i32 = arith.constant 2 : i32
    %0 = arith.muli %arg0, %c2_i32 : i32
    %1 = arith.addi %0, %arg1 : i32
    %c0_i32 = arith.constant 0 : i32
    %c0_i32_0 = arith.constant 0 : i32
    %c0_i32_1 = arith.constant 0 : i32
    %c0_i32_2 = arith.constant 0 : i32
    return %1, %c0_i32, %c0_i32_0, %c0_i32_1 : i32, i32, i32, i32
  }
  func.func @transform_1(%arg0: i32, %arg1: i32) -> (i32, i32, i32) {
    %c2_i32 = arith.constant 2 : i32
    %0 = arith.muli %arg0, %c2_i32 : i32
    %1 = arith.addi %0, %arg1 : i32
    %c0_i32 = arith.constant 0 : i32
    %c0_i32_0 = arith.constant 0 : i32
    %c0_i32_1 = arith.constant 0 : i32
    return %1, %c0_i32, %c0_i32_0 : i32, i32, i32
  }
}

</mosaic_0001>

<bundles_post_ra>
// kernel: tpu_custom_call.1
= control target key start
LH: loop header
LB: loop body
LE: loop exit
PB: predicated region body
PF: predicated region fallthrough
CT: control target
= control target key end

     0   :  { %6 = vsyncpa [#allocation3], 0  ;;  %s957_s0 = inlined_call_operand.hbm [shape: f32[8,1,32,64], index: 0, kind: input, shape index: {}]   ;;  %s958_s1 = inlined_call_operand.vmem [shape: f32[8,1,1], index: 1, kind: output, shape index: {}]  }
   0x1   :  { %8 = vsyncpa [#allocation3 + $0x1], 0  ;;  %s809_s6 = smov 0   ;;  %s811_s7 = smov 0  }
   0x2   :  { %s813_s8 = smov 0   ;;  %s815_s9 = smov 0  }
   0x3   :  { %s817_s10 = smov 0   ;;  %s819_s11 = smov 0  }
   0x4   :  { %s821_s12 = smov 0   ;;  %s823_s13 = smov 0  }
   0x5 LB: > { %s558_s14 = sadd.s32 4294967295, %s791_s13   ;;  %s23_s15 = sadd.s32 1, %s783_s11  ;;  %s791_s13 = sphi %s823_s13, %s14_s13   ;;  %s787_s12 = sphi %s821_s12, %s968_s12   ;;  %s783_s11 = sphi %s819_s11, %s967_s11   ;;  %s779_s10 = sphi %s817_s10, %s966_s10   ;;  %s775_s9 = sphi %s815_s9, %s965_s9   ;;  %s771_s8 = sphi %s813_s8, %s964_s8   ;;  %s767_s7 = sphi %s811_s7, %s963_s7   ;;  %s763_s6 = sphi %s809_s6, %s962_s6  }
   0x6   : > { %p24_p0 = scmp.ge.s32.totalorder %s23_s15, 2  ;;  %s26_s16 = sadd.s32 1, %s787_s12 }
   0x7   : > { %s560_s17 = sshll.u32 %s787_s12, 1  ;;  %s37_s18 = sadd.s32 1, %s771_s8 }
   0x8   : > { %s970_s15 = smov (%p24_p0, %s23_s15), 0  ;;  %s972_s16 = smov (!%p24_p0, %s26_s16), %s787_s12 }
   0x9   : > { %s31_s19 = sadd.s32 %s783_s11, %s560_s17  ;;  %p44_p1 = scmp.ne.s32.totalorder %s771_s8, %s767_s7 }
   0xa   : > { %p28_p2 = scmp.ge.s32.totalorder %s972_s16, 4  ;;  %p45_p3 = scmp.eq.s32.totalorder %s791_s13, 0 }
   0xb   : > { %p50_p4 = scmp.ne.s32.totalorder %s767_s7, %s763_s6  ;;  %p51_p5 = scmp.eq.s32.totalorder %s558_s14, 0 }
   0xc   : > { %s974_s16 = smov (%p28_p2, %s972_s16), 0  ;;  %p862_p6 = por %p45_p3, %p44_p1 }
   0xd   : > { %p866_p7 = por %p51_p5, %p50_p4  ;;  %s561_s22 = sshll.u32 %s974_s16, 1 }
   0xe   : > { %s33_s23 = sadd.s32 %s561_s22, %s970_s15  ;;  %p619_p8 = scmp.lt.s32.totalorder %s791_s13, 8 }
   0xf   : > { %s34_s24 = ssub.s32 %s31_s19, %s33_s23  ;;  %s104_s25 = sand.u32 1, %s771_s8  }
  0x10   : > { %p35_p9 = scmp.eq.s32.totalorder %s34_s24, 0  ;;  %s566_s26 = sshll.u32 %s104_s25, 5 }
  0x11   : > { %s582_s27 = sshll.u32 %s31_s19, 9  ;;  %s108_s3 = scalar_lea.vmem [#allocation2], %s566_s26 }
  0x12   : > { %s875_s28 = scalar_select %p35_p9, %s771_s8, %s37_s18  }
  0x13   : > { %s116_s2 = scalar_lea.hbm %s957_s0, %s582_s27  ;;  %s117_s4 = sshll.u32 %s108_s3, 4  ;;  %s118_s4 = int_to_ptr.vmem [resolvable:$true] %s117_s4 }
  0x14   : > { %p882_p10 = pnand %p619_p8, %p862_p6  ;;  %s105_s6 = scalar_lea.sflag [#allocation3], %s104_s25 }
  0x15   : > { %s710_s14 = scalar_lea.vmem %s118_s4, 512  ;;  %s793_s17 = smov [#allocation2]  }
  0x16   : > { %p699_p11 = pneg %p882_p10  ;;  %p711_p12 = scmp.ne.s32.totalorder %s118_s4, %s710_s14 }
  0x17   : > { %s715_s18 = sshll.u32 %s793_s17, 4  ;;  %s716_s18 = int_to_ptr.vmem [resolvable:$false] %s715_s18 }
  0x18   : > { %p713_p13 = pnand %p711_p12, %p699_p11  ;;  %s717_s19 = scalar_lea.vmem %s716_s18, 1024 }
  0x19   : > { %p718_p1 = scmp.lt.s32.totalorder %s118_s4, %s716_s18  ;;  %p719_p2 = scmp.lt.s32.totalorder %s717_s19, %s710_s14 }
  0x1a   : > { %p714_p0 = pneg %p713_p13 }
  0x1b   : > { %p720_p3 = por %p719_p2, %p718_p1 }
  0x1d   : > { %p721_p4 = pnand %p720_p3, %p714_p0 }
  0x1f   : > { %724 = shalt.err (!%p721_p4)
}
  0x20   : > { %s794_s20 = smov 128   ;;  %s795_s22 = smov 8  }
  0x21   : > { %618 = dma.hbm_to_vmem [thread:$0]  (!%p882_p10), %s116_s2, 512, %s118_s4, %s105_s6, %s794_s20, %s794_s20, %s795_s22  }
  0x22   : > { %p570_p5 = scmp.ge.s32.totalorder %s791_s13, 1  ;;  %p125_p6 = scmp.lt.s32.totalorder %s791_s13, 9 }
  0x24   : > { %p126_p8 = pnand %p570_p5, %p125_p6 }
  0x25   : > { %s131_s23 = sand.u32 (!%p126_p8), 1, %s767_s7  }
  0x26   : > { %129 = sbr.rel (%p126_p8) target bundleno = 870 (0x366), region = 24  ;;  %s571_s24 = sshll.u32 (!%p126_p8), %s131_s23, 5 }
  0x27   : > { %s132_s25 = scalar_lea.sflag (!%p126_p8), [#allocation3], %s131_s23  ;;  %s135_s26 = scalar_lea.vmem (!%p126_p8), [#allocation2], %s571_s24 }
  0x2b   : > { %758 = dma.done.wait (%p866_p7), %s132_s25, 512  }
  0x2c   : > { %760 = vsyncadd (%p866_p7), %s132_s25, 4294966784  ;;  %v796_v0 = vmov 0.0   ;;  %vm797_vm0 = vmmov 0   ;;  %v167_v1 = vld [vmem:[%s135_s26 + $0x18] sm:$0xff]  ;;  %vm172_vm1 = vcmask 523264   ;;  %v166_v2 = vld [vmem:[%s135_s26 + $0x10] sm:$0xff]  ;;  %v327_v18 = vlaneseq }
  0x2d   : > { %592 = vmatprep.subr.mxu0 %v796_v0  ;;  %600 = vmatprep.mubr.msk.f32.mxu0 %vm797_vm0, %v796_v0  ;;  %v165_v3 = vld [vmem:[%s135_s26 + $0x8] sm:$0xff]  ;;  %v171_v4 = vmul.f32 %v167_v1, %v167_v1  ;;  %v170_v5 = vmul.f32 %v166_v2, %v166_v2  ;;  %v271_v6 = vpack.c.bf16 %v167_v1, %v166_v2  ;;  %v164_v7 = vld [vmem:[%s135_s26] sm:$0xff]  ;;  %v798_v17 = vmov 1.0   ;;  %s572_s21 = sshll.u32 %s779_s10, 1 }
  0x2e   : > { %v270_v8 = vpack.c.bf16 %v165_v3, %v164_v7  ;;  %v168_v9 = vmul.f32 %v164_v7, %v164_v7  ;;  %v169_v13 = vmul.f32 %v165_v3, %v165_v3  ;;  %v328_v19 = vshrl.u32 %v327_v18, 7  ;;  %s157_s27 = sadd.s32 %s775_s9, %s572_s21 }
  0x2f   : > { %593 = vmatpush3.xpose.msk.msra.mxu0 %vm172_vm1, %v171_v4  ;;  %611 = vmatprep.subr.msk.bf16.mxu1 %vm172_vm1, %v271_v6  ;;  %v276_v10 = vsel %vm172_vm1, %v271_v6, 0  ;;  %v179_v11 = vsel %vm172_vm1, %v170_v5, 0.0  ;;  %v182_v14 = vsel %vm172_vm1, %v171_v4, 0.0  ;;  %v333_v22 = vand.u32 127, %v327_v18  ;;  %p158_p7 = scmp.lt.s32.totalorder %s157_s27, 7 }
  0x30   : > { %604 = vmatpush3.bf16.xpose.msra.mxu1 %v276_v10  ;;  %594 = vmatprep.subr.mxu0 %v796_v0  ;;  %v173_v12 = vsel %vm172_vm1, %v168_v9, 0.0  ;;  %v176_v15 = vsel %vm172_vm1, %v169_v13, 0.0  ;;  %v273_v16 = vsel %vm172_vm1, %v270_v8, 0  ;;  %v336_v21 = vsub.s32 0, %v328_v19 }
  0x31   : > { %612 = vmatprep.subr.msk.bf16.mxu1 %vm172_vm1, %v270_v8  ;;  %607 = vmatprep.mubr.msk.bf16.mxu1 %vm172_vm1, %v270_v8  ;;  %v330_v28 = vadd.s32 16, %v328_v19  ;;  %v362_v31 = vcvt.s32.f32 %v333_v22  ;;  %vm354_vm3 = vcmp.eq.s32.totalorder %v328_v19, %v333_v22  ;;  %v331_v44 = vadd.s32 24, %v328_v19  ;;  %s976_s27 = smov (!%p158_p7, %s157_s27), 7 }
  0x32   : > { %180 = vadd.xlane.f32.xlu1 %v179_v11  ;;  %174 = vadd.xlane.f32.xlu0 %v173_v12  ;;  %v329_v46 = vadd.s32 8, %v328_v19  ;;  %vm368_vm4 = vcmask 261120   ;;  %s160_s2 = scalar_lea.vmem %s958_s1, %s976_s27 }
  0x33   : > { %595 = vmatpush3.xpose.msk.msra.mxu0 %vm172_vm1, %v170_v5  ;;  %vm356_vm2 = vcmp.eq.s32.totalorder %v330_v28, %v333_v22  ;;  %v363_v42 = vmul.f32 1e-07, %v362_v31  ;;  %vm357_vm5 = vcmp.eq.s32.totalorder %v331_v44, %v333_v22 }
  0x34   : > { %596 = vmatprep.subr.mxu0 %v796_v0  ;;  %vm355_vm6 = vcmp.eq.s32.totalorder %v329_v46, %v333_v22 }
  0x36   : > { %183 = vadd.xlane.f32.xlu1 %v182_v14  ;;  %177 = vadd.xlane.f32.xlu0 %v176_v15 }
  0x37   : > { %597 = vmatpush3.xpose.msk.msra.mxu0 %vm172_vm1, %v169_v13 }
  0x38   : > { %606 = vmatpush3.bf16.xpose.msra.mxu1 %v273_v16  ;;  %598 = vmatprep.subr.mxu0 %v796_v0 }
  0x3b   : > { %599 = vmatpush3.xpose.msk.msra.mxu0 %vm172_vm1, %v168_v9 }
  0x3e   : > { %601 = vmatmul.mubr.msk.f32.vlgmr.msra.gmra.mxu0 %vm172_vm1, %v798_v17 }
  0x3f   : > { %608 = vmatmul.mubr.msk.bf16.vlgmr.msra.gmra.mxu1 %vm172_vm1, %v271_v6 }
  0xbb   : > { %v181_v20 = vpop.xlane.xlu1 %180  ;;  %v175_v23 = vpop.xlane.xlu0 %174 }
  0xbf   : > { %v184_v27 = vpop.xlane.xlu1 %183  ;;  %v178_v39 = vpop.xlane.xlu0 %177 }
  0xfe   : > { %v266_v24 = vpop.f32.mrf.mxu0 }
  0xff   : > { %v337_v25 = vrot.slane %v266_v24, %v336_v21  ;;  %v609_v26 = vpop.f32.mrf.mxu1 }
 0x100   : > { %v344_v29 = vmul.f32 2.0, %v609_v26  ;;  %v602_v30 = vpop.f32.mrf.mxu0 }
 0x101   : > { %v340_v32 = vadd.f32 %v337_v25, %v181_v20  ;;  %v338_v33 = vadd.f32 %v337_v25, %v175_v23  ;;  %v312_v34 = vpop.f32.mrf.mxu1  ;;  %v341_v36 = vadd.f32 %v337_v25, %v184_v27  ;;  %v339_v49 = vadd.f32 %v337_v25, %v178_v39 }
 0x102   : > { %v342_v35 = vmul.f32 2.0, %v312_v34 }
 0x103   : > { %v348_v37 = vsub.f32 %v340_v32, %v344_v29  ;;  %v610_v38 = vpop.f32.mrf.mxu1 }
 0x104   : > { %v346_v40 = vsub.f32 %v338_v33, %v342_v35  ;;  %v345_v41 = vmul.f32 2.0, %v610_v38 }
 0x105   : > { %v352_v43 = vmax.f32 %v348_v37, 0.01  ;;  %v315_v45 = vpop.f32.mrf.mxu1 }
 0x106   : > { %v350_v47 = vmax.f32 %v346_v40, 0.01  ;;  %v349_v48 = vsub.f32 %v341_v36, %v345_v41  ;;  %v343_v50 = vmul.f32 2.0, %v315_v45 }
 0x107   : > { %v360_v51 = vsel %vm356_vm2, 0.01, %v352_v43 }
 0x108   : > { %v358_v52 = vsel %vm354_vm3, 0.01, %v350_v47  ;;  %v353_v53 = vmax.f32 %v349_v48, 0.01  ;;  %v347_v54 = vsub.f32 %v339_v49, %v343_v50  ;;  %v366_v58 = vadd.f32 %v363_v42, %v360_v51 }
 0x109   : > { %v364_v55 = vadd.f32 %v363_v42, %v358_v52 }
 0x10a   : > { %v351_v56 = vmax.f32 %v347_v54, 0.01  ;;  %v361_v59 = vsel %vm357_vm5, 0.01, %v353_v53  ;;  %v375_v62 = vsel %vm368_vm4, %v366_v58, inf }
 0x10b   : > { %v369_v57 = vsel %vm368_vm4, %v364_v55, inf  ;;  %v367_v0 = vadd.f32 %v363_v42, %v361_v59 }
 0x10c   : > { %v359_v60 = vsel %vm355_vm6, 0.01, %v351_v56  ;;  %370 = vmin.xlane.f32.xlu0 %v369_v57 }
 0x10d   : > { %v365_v61 = vadd.f32 %v363_v42, %v359_v60  ;;  %v378_v1 = vsel %vm368_vm4, %v367_v0, inf }
 0x10f   : > { %v372_v63 = vsel %vm368_vm4, %v365_v61, inf }
 0x110   : > { %376 = vmin.xlane.f32.xlu0 %v375_v62  ;;  %373 = vmin.xlane.f32.xlu1 %v372_v63 }
 0x114   : > { %379 = vmin.xlane.f32.xlu1 %v378_v1 }
 0x195   : > { %v371_v2 = vpop.xlane.xlu0 %370 }
 0x196   : > { %vm381_vm7 = vcmp.eq.f32.partialorder %v364_v55, %v371_v2 }
 0x197   : > { %v385_v3 = vsel %vm381_vm7, 1e+30, %v364_v55 }
 0x198   : > { %v389_v4 = vsel %vm368_vm4, %v385_v3, inf }
 0x199   : > { %v374_v5 = vpop.xlane.xlu1 %373  ;;  %390 = vmin.xlane.f32.xlu0 %v389_v4  ;;  %v377_v6 = vpop.xlane.xlu0 %376 }
 0x19a   : > { %vm382_vm8 = vcmp.eq.f32.partialorder %v365_v61, %v374_v5  ;;  %vm383_vm9 = vcmp.eq.f32.partialorder %v366_v58, %v377_v6 }
 0x19b   : > { %v386_v7 = vsel %vm382_vm8, 1e+30, %v365_v61  ;;  %v387_v8 = vsel %vm383_vm9, 1e+30, %v366_v58 }
 0x19c   : > { %v392_v9 = vsel %vm368_vm4, %v386_v7, inf  ;;  %v395_v10 = vsel %vm368_vm4, %v387_v8, inf }
 0x19d   : > { %393 = vmin.xlane.f32.xlu1 %v392_v9  ;;  %v380_v11 = vpop.xlane.xlu1 %379  ;;  %396 = vmin.xlane.f32.xlu0 %v395_v10 }
 0x19e   : > { %vm384_vm10 = vcmp.eq.f32.partialorder %v367_v0, %v380_v11 }
 0x19f   : > { %v388_v12 = vsel %vm384_vm10, 1e+30, %v367_v0 }
 0x1a0   : > { %v398_v13 = vsel %vm368_vm4, %v388_v12, inf }
 0x1a1   : > { %399 = vmin.xlane.f32.xlu1 %v398_v13 }
 0x222   : > { %v391_v14 = vpop.xlane.xlu0 %390 }
 0x223   : > { %vm401_vm11 = vcmp.eq.f32.partialorder %v385_v3, %v391_v14 }
 0x224   : > { %v405_v15 = vsel %vm401_vm11, 1e+30, %v385_v3  ;;  %vm478_vm11 = vcmask 0  }
 0x225   : > { %v409_v16 = vsel %vm368_vm4, %v405_v15, inf }
 0x226   : > { %v394_v17 = vpop.xlane.xlu1 %393  ;;  %410 = vmin.xlane.f32.xlu0 %v409_v16  ;;  %v397_v18 = vpop.xlane.xlu0 %396 }
 0x227   : > { %vm402_vm12 = vcmp.eq.f32.partialorder %v386_v7, %v394_v17  ;;  %vm403_vm13 = vcmp.eq.f32.partialorder %v387_v8, %v397_v18 }
 0x228   : > { %v406_v19 = vsel %vm402_vm12, 1e+30, %v386_v7  ;;  %v407_v20 = vsel %vm403_vm13, 1e+30, %v387_v8 }
 0x229   : > { %v412_v21 = vsel %vm368_vm4, %v406_v19, inf  ;;  %v415_v22 = vsel %vm368_vm4, %v407_v20, inf }
 0x22a   : > { %413 = vmin.xlane.f32.xlu1 %v412_v21  ;;  %v400_v23 = vpop.xlane.xlu1 %399  ;;  %416 = vmin.xlane.f32.xlu0 %v415_v22 }
 0x22b   : > { %vm404_vm14 = vcmp.eq.f32.partialorder %v388_v12, %v400_v23 }
 0x22c   : > { %v408_v24 = vsel %vm404_vm14, 1e+30, %v388_v12 }
 0x22d   : > { %v418_v25 = vsel %vm368_vm4, %v408_v24, inf }
 0x22e   : > { %419 = vmin.xlane.f32.xlu1 %v418_v25 }
 0x2af   : > { %v411_v26 = vpop.xlane.xlu0 %410 }
 0x2b0   : > { %vm421_vm15 = vcmp.eq.f32.partialorder %v405_v15, %v411_v26 }
 0x2b1   : > { %v425_v27 = vsel %vm421_vm15, 1e+30, %v405_v15 }
 0x2b2   : > { %v429_v28 = vsel %vm368_vm4, %v425_v27, inf }
 0x2b3   : > { %v414_v29 = vpop.xlane.xlu1 %413  ;;  %430 = vmin.xlane.f32.xlu0 %v429_v28  ;;  %v417_v30 = vpop.xlane.xlu0 %416 }
 0x2b4   : > { %vm422_vm0 = vcmp.eq.f32.partialorder %v406_v19, %v414_v29  ;;  %vm423_vm1 = vcmp.eq.f32.partialorder %v407_v20, %v417_v30 }
 0x2b5   : > { %v426_v31 = vsel %vm422_vm0, 1e+30, %v406_v19  ;;  %v427_v32 = vsel %vm423_vm1, 1e+30, %v407_v20 }
 0x2b6   : > { %v432_v33 = vsel %vm368_vm4, %v426_v31, inf  ;;  %v435_v34 = vsel %vm368_vm4, %v427_v32, inf }
 0x2b7   : > { %433 = vmin.xlane.f32.xlu1 %v432_v33  ;;  %v420_v35 = vpop.xlane.xlu1 %419  ;;  %436 = vmin.xlane.f32.xlu0 %v435_v34 }
 0x2b8   : > { %vm424_vm2 = vcmp.eq.f32.partialorder %v408_v24, %v420_v35 }
 0x2b9   : > { %v428_v36 = vsel %vm424_vm2, 1e+30, %v408_v24 }
 0x2ba   : > { %v438_v37 = vsel %vm368_vm4, %v428_v36, inf }
 0x2bb   : > { %439 = vmin.xlane.f32.xlu1 %v438_v37 }
 0x33c   : > { %v431_v38 = vpop.xlane.xlu0 %430 }
 0x33d   : > { %689 = vrsqrt.f32 %v431_v38  ;;  %vm443_vm3 = vcmp.eq.f32.partialorder %v431_v38, inf  ;;  %v446_v48 = vand.u32 2147483648, %v431_v38  ;;  %vm445_vm4 = vcmp.eq.f32.partialorder %v431_v38, 0.0 }
 0x340   : > { %v434_v39 = vpop.xlane.xlu1 %433  ;;  %v437_v40 = vpop.xlane.xlu0 %436 }
 0x341   : > { %691 = vrsqrt.f32 %v434_v39  ;;  %vm450_vm5 = vcmp.eq.f32.partialorder %v434_v39, inf  ;;  %v453_v49 = vand.u32 2147483648, %v434_v39  ;;  %vm452_vm6 = vcmp.eq.f32.partialorder %v434_v39, 0.0 }
 0x342   : > { %693 = vrsqrt.f32 %v437_v40  ;;  %vm457_vm7 = vcmp.eq.f32.partialorder %v437_v40, inf  ;;  %v460_v56 = vand.u32 2147483648, %v437_v40  ;;  %vm459_vm8 = vcmp.eq.f32.partialorder %v437_v40, 0.0 }
 0x344   : > { %v440_v41 = vpop.xlane.xlu1 %439 }
 0x345   : > { %695 = vrsqrt.f32 %v440_v41  ;;  %vm464_vm9 = vcmp.eq.f32.partialorder %v440_v41, inf  ;;  %v467_v60 = vand.u32 2147483648, %v440_v41  ;;  %vm466_vm10 = vcmp.eq.f32.partialorder %v440_v41, 0.0 }
 0x34a   : > { %v690_v42 = vpop.eup %689 }
 0x34b   : > { %v442_v43 = vmul.f32 %v690_v42, %v431_v38 }
 0x34d   : > { %v444_v46 = vsel %vm443_vm3, %v431_v38, %v442_v43 }
 0x34e   : > { %v692_v44 = vpop.eup %691  ;;  %v447_v53 = vsel %vm445_vm4, %v446_v48, %v444_v46 }
 0x34f   : > { %v694_v45 = vpop.eup %693  ;;  %v449_v47 = vmul.f32 %v692_v44, %v434_v39 }
 0x350   : > { %v456_v50 = vmul.f32 %v694_v45, %v437_v40 }
 0x351   : > { %v451_v51 = vsel %vm450_vm5, %v434_v39, %v449_v47 }
 0x352   : > { %v696_v52 = vpop.eup %695  ;;  %v454_v54 = vsel %vm452_vm6, %v453_v49, %v451_v51  ;;  %v458_v55 = vsel %vm457_vm7, %v437_v40, %v456_v50 }
 0x353   : > { %v469_v57 = vadd.f32 %v454_v54, %v447_v53  ;;  %v463_v58 = vmul.f32 %v696_v52, %v440_v41  ;;  %v461_v59 = vsel %vm459_vm8, %v460_v56, %v458_v55 }
 0x355   : > { %v470_v61 = vadd.f32 %v469_v57, %v461_v59  ;;  %v465_v62 = vsel %vm464_vm9, %v440_v41, %v463_v58 }
 0x356   : > { %v468_v63 = vsel %vm466_vm10, %v467_v60, %v465_v62 }
 0x357   : > { %v471_v0 = vadd.f32 %v470_v61, %v468_v63 }
 0x359   : > { %v472_v1 = vrot.slane %v471_v0, 4 }
 0x35b   : > { %v473_v2 = vadd.f32 %v472_v1, %v471_v0 }
 0x35d   : > { %v474_v3 = vrot.slane %v473_v2, 2 }
 0x35f   : > { %v475_v4 = vadd.f32 %v474_v3, %v473_v2 }
 0x361   : > { %v476_v5 = vrot.slane %v475_v4, 1 }
 0x363   : > { %v477_v6 = vadd.f32 %v476_v5, %v475_v4 }
 0x365   : > { %479 = vst.msk [vmem:[%s160_s2] sm:$0x1] %vm478_vm11, %v477_v6 }
 0x366 PF: > { %s14_s13 = sadd.s32 1, %s791_s13   ;;  %s962_s6 = smov %s767_s7 }
 0x367   : > { %p11_p9 = scmp.ge.s32.totalorder %s14_s13, 10   ;;  %s963_s7 = smov %s771_s8 }
 0x368   : > { %s964_s8 = smov %s875_s28  ;;  %s965_s9 = smov %s783_s11 }
 0x369   : > { %s966_s10 = smov %s787_s12  ;;  %s967_s11 = smov %s970_s15 }
 0x36a   : > { %s968_s12 = smov %s974_s16  ;;  %13 = sbr.rel (!%p11_p9) target bundleno = 5 (0x5), region = 64 }
 0x36f   :  { %503 = vsyncpa [#allocation3], 1 }
 0x370   :  { %505 = vsyncpa [#allocation3 + $0x1], 1 }

</bundles_post_ra>
